<compile_context>
chip_gen: v7x
topology: tpu7x:2x2x1
jax: 0.10.0
libtpu: 0.0.40
codegen_flags: <defaults>
</compile_context>

<pallas_src>
import jax
import jax.numpy as jnp
from jax.experimental import pallas as pl
from jax.experimental.pallas import tpu as pltpu


def _round_up(x, m):
    return (x + m - 1) // m * m


# ----------------------------------------------------------------------------
# Stage 1: projected features  xw = [seq1 @ W | seq2 @ W]   -> bf16 (N, 2*n_h)
# ----------------------------------------------------------------------------
def _xw_kernel(seq1_ref, seq2_ref, w_ref, xw_ref):
    w = w_ref[...]                                                  # (n_in, n_h) f32
    x1 = jnp.dot(seq1_ref[...], w, preferred_element_type=jnp.float32)
    x2 = jnp.dot(seq2_ref[...], w, preferred_element_type=jnp.float32)
    xw_ref[...] = jnp.concatenate([x1, x2], axis=1).astype(xw_ref.dtype)


# ----------------------------------------------------------------------------
# Stage 2: fused GCN on both branches:
#   h[:, :n_h]  = PReLU(adj @ xw1 + b) ,  h[:, n_h:] = PReLU(adj @ xw2 + b)
# Tiled: grid = (row tiles [parallel], reduction tiles [arbitrary]).
# ----------------------------------------------------------------------------
def _gcn_kernel(adj_ref, xw_ref, b2_ref, alpha_ref, h_ref, acc_ref):
    k = pl.program_id(1)

    @pl.when(k == 0)
    def _():
        acc_ref[...] = jnp.zeros_like(acc_ref)

    # bf16 x bf16 matmul with f32 accumulation on the MXU.
    acc_ref[...] += jnp.dot(adj_ref[...], xw_ref[...],
                            preferred_element_type=jnp.float32)

    @pl.when(k == pl.num_programs(1) - 1)
    def _():
        alpha = alpha_ref[0, 0]                                     # SMEM scalar
        pre = acc_ref[...] + b2_ref[...]                            # f32
        h_ref[...] = jnp.where(pre > 0, pre, alpha * pre)           # PReLU


# ----------------------------------------------------------------------------
# Stage 3: bilinear discriminator scores, lane-dense (2, N) output.
#   selwc = [[wc, 0], [0, wc]]  (built in the wrapper, wc = W_bil @ c)
#   sc    = selwc @ h^T + b_bil
# ----------------------------------------------------------------------------
def _disc_kernel(h_ref, selwc_ref, b_ref, sc_ref):
    sc = jnp.dot(selwc_ref[...], h_ref[...].T,
                 preferred_element_type=jnp.float32)                # (2, tile)
    sc_ref[...] = sc + b_ref[0, 0]


# ----------------------------------------------------------------------------
# Wrapper
# ----------------------------------------------------------------------------
def dgi_bw_forward(seq1, seq2, adj, params, sparse=False, msk=None,
                   samp_bias1=None, samp_bias2=None, tile=512):
    """seq1/seq2: (1, N, n_in) or (N, n_in); adj: (N, N) dense.
    Returns logits of shape (1, 2N)."""
    # TODO(synk): only the dense / msk=None / samp_bias=None path is implemented.
    s1 = seq1.reshape(-1, seq1.shape[-1]).astype(jnp.float32)
    s2 = seq2.reshape(-1, seq2.shape[-1]).astype(jnp.float32)
    a = (adj if adj.ndim == 2 else adj[0]).astype(jnp.float32)

    N, n_in = s1.shape
    n_h = params["w_gcn"].shape[1]

    # ---- tile / padding choices (tile must be a multiple of 128 and divide N_pad)
    n_pad = _round_up(N, 128)
    t = max(128, min(int(tile) // 128 * 128, n_pad))
    while n_pad % t != 0:
        t -= 128
    tile = t
    N_pad = n_pad
    pad = N_pad - N
    num_i = N_pad // tile

    s1p = jnp.pad(s1, ((0, pad), (0, 0)))
    s2p = jnp.pad(s2, ((0, pad), (0, 0)))
    # bf16 adjacency feed for the MXU (row-normalized values tolerate bf16;
    # accumulation stays f32). In a training loop this cast amortizes.
    adj_p = jnp.pad(a, ((0, pad), (0, pad))).astype(jnp.bfloat16)

    b2 = jnp.concatenate([params["b_gcn"], params["b_gcn"]], axis=1)  # (1, 2*n_h)
    alpha = params["prelu_alpha"].reshape(1, 1).astype(jnp.float32)   # (1, 1)
    b_bil = params["b_bil"].reshape(1, 1).astype(jnp.float32)         # (1, 1)

    # -------- stage 1: xw = [seq1 @ W | seq2 @ W]  (bf16) --------
    xw = pl.pallas_call(
        _xw_kernel,
        out_shape=jax.ShapeDtypeStruct((N_pad, 2 * n_h), jnp.bfloat16),
        grid=(num_i,),
        in_specs=[
            pl.BlockSpec((tile, n_in), lambda i: (i, 0)),
            pl.BlockSpec((tile, n_in), lambda i: (i, 0)),
            pl.BlockSpec((n_in, n_h), lambda i: (0, 0)),
        ],
        out_specs=pl.BlockSpec((tile, 2 * n_h), lambda i: (i, 0)),
        compiler_params=pltpu.CompilerParams(dimension_semantics=("parallel",)),
    )(s1p, s2p, params["w_gcn"].astype(jnp.float32))

    # -------- stage 2: tiled fused GCN  h = PReLU(adj @ [xw1|xw2] + b) --------
    h = pl.pallas_call(
        _gcn_kernel,
        out_shape=jax.ShapeDtypeStruct((N_pad, 2 * n_h), jnp.float32),
        grid=(num_i, num_i),
        in_specs=[
            pl.BlockSpec((tile, tile), lambda i, k: (i, k)),            # adj (bf16)
            pl.BlockSpec((tile, 2 * n_h), lambda i, k: (k, 0)),         # xw  (bf16)
            pl.BlockSpec((1, 2 * n_h), lambda i, k: (0, 0)),            # bias (f32)
            pl.BlockSpec(memory_space=pltpu.MemorySpace.SMEM),          # alpha
        ],
        out_specs=pl.BlockSpec((tile, 2 * n_h), lambda i, k: (i, 0)),
        scratch_shapes=[pltpu.VMEM((tile, 2 * n_h), jnp.float32)],
        compiler_params=pltpu.CompilerParams(
            dimension_semantics=("parallel", "arbitrary")),
    )(adj_p, xw, b2, alpha)

    # -------- readout + bilinear weight fold (tiny, plain JAX) --------
    # TODO(synk): mean-readout + (n_h x n_h) matvec are O(N*n_h) — left to XLA.
    c = jax.nn.sigmoid(jnp.mean(h[:N, :n_h], axis=0))                   # (n_h,)
    wc = jnp.dot(params["w_bil"].astype(jnp.float32), c)                # (n_h,)
    z = jnp.zeros((n_h,), jnp.float32)
    selwc = jnp.stack([jnp.concatenate([wc, z]),
                       jnp.concatenate([z, wc])], axis=0)               # (2, 2*n_h)

    # -------- stage 3: discriminator scores, lane-dense (2, N_pad) --------
    sc = pl.pallas_call(
        _disc_kernel,
        out_shape=jax.ShapeDtypeStruct((2, N_pad), jnp.float32),
        grid=(num_i,),
        in_specs=[
            pl.BlockSpec((tile, 2 * n_h), lambda i: (i, 0)),            # h
            pl.BlockSpec((2, 2 * n_h), lambda i: (0, 0)),               # selwc
            pl.BlockSpec(memory_space=pltpu.MemorySpace.SMEM),          # b_bil
        ],
        out_specs=pl.BlockSpec((2, tile), lambda i: (0, i)),
        compiler_params=pltpu.CompilerParams(dimension_semantics=("parallel",)),
    )(h, selwc, b_bil)

    # logits = cat(sc(h1), sc(h2)) -> (1, 2N)
    logits = jnp.concatenate([sc[0, :N], sc[1, :N]], axis=0)[None, :]
    return logits


# ----------------------------------------------------------------------------
# Pure-JAX reference (same semantics) for a numerical sanity check.
# ----------------------------------------------------------------------------
def _reference_forward(seq1, seq2, adj, params):
    s1 = seq1.reshape(-1, seq1.shape[-1])
    s2 = seq2.reshape(-1, seq2.shape[-1])
    a = adj if adj.ndim == 2 else adj[0]
    w, b = params["w_gcn"], params["b_gcn"]
    alpha = params["prelu_alpha"].reshape(())

    def gcn(s):
        pre = a @ (s @ w) + b
        return jnp.where(pre > 0, pre, alpha * pre)

    h1, h2 = gcn(s1), gcn(s2)
    c = jax.nn.sigmoid(jnp.mean(h1, axis=0))
    wc = params["w_bil"] @ c
    b_bil = params["b_bil"].reshape(())
    sc1 = h1 @ wc + b_bil
    sc2 = h2 @ wc + b_bil
    return jnp.concatenate([sc1, sc2])[None, :]


if __name__ == "__main__":
    key = jax.random.PRNGKey(0)
    k1, k2, k3, k4, k5 = jax.random.split(key, 5)

    # Small but non-trivial: N=300 with tile=128 exercises padding (N_pad=384)
    # and a multi-step (3 x 3) reduction grid.
    N, n_in, n_h = 300, 8, 32

    seq1 = jax.random.normal(k1, (1, N, n_in), dtype=jnp.float32)
    seq2 = jax.random.normal(k2, (1, N, n_in), dtype=jnp.float32)

    # symmetric, row-normalized adjacency with self-loops
    a = (jax.random.uniform(k3, (N, N)) < 0.3).astype(jnp.float32)
    adj = a + a.T + jnp.eye(N, dtype=jnp.float32)
    adj = adj / jnp.sum(adj, axis=1, keepdims=True)

    # deterministic parameter init (xavier-uniform style ranges)
    lim_gcn = (6.0 / (n_in + n_h)) ** 0.5
    w_gcn = jax.random.uniform(k4, (n_in, n_h), minval=-lim_gcn, maxval=lim_gcn,
                               dtype=jnp.float32)
    b_gcn = jnp.zeros((1, n_h), dtype=jnp.float32)

    lim_bil = (6.0 / (n_h + n_h)) ** 0.5
    w_bil = jax.random.uniform(k5, (n_h, n_h), minval=-lim_bil, maxval=lim_bil,
                               dtype=jnp.float32)
    b_bil = jnp.zeros((1, 1), dtype=jnp.float32)

    params = {
        "w_gcn": w_gcn,
        "b_gcn": b_gcn,
        "prelu_alpha": jnp.full((1, 1), 0.25, dtype=jnp.float32),
        "w_bil": w_bil,
        "b_bil": b_bil,
    }

    logits = dgi_bw_forward(seq1, seq2, adj, params,
                            sparse=False, msk=None,
                            samp_bias1=None, samp_bias2=None, tile=128)
    jax.block_until_ready(logits)

    assert logits.shape == (1, 2 * N), logits.shape
    assert bool(jnp.all(jnp.isfinite(logits)))

    ref = _reference_forward(seq1, seq2, adj, params)
    max_err = float(jnp.max(jnp.abs(logits - ref)))
    assert max_err < 5e-2, f"max abs err vs reference = {max_err}"

    print("KERNEL_OK")
</pallas_src>

<mosaic_0001>
module attributes {stable_mosaic.version = 11 : i64} {
  func.func @_xw_kernel(%arg0: i32, %arg1: memref<128x8xf32, #tpu.memory_space<vmem>>, %arg2: memref<128x8xf32, #tpu.memory_space<vmem>>, %arg3: memref<8x32xf32, #tpu.memory_space<vmem>>, %arg4: memref<128x64xbf16, #tpu.memory_space<vmem>>) attributes {dimension_semantics = [#tpu.dimension_semantics<parallel>], iteration_bounds = array<i64: 3>, scalar_prefetch = 0 : i64, scratch_operands = 0 : i64, tpu.core_type = #tpu.core_type<tc>, window_params = [{transform_indices = @transform_0, window_bounds = array<i64: 128, 8>}, {transform_indices = @transform_1, window_bounds = array<i64: 128, 8>}, {pipeline_mode = #tpu.pipeline_mode<synchronous>, transform_indices = @transform_2, window_bounds = array<i64: 8, 32>}, {transform_indices = @transform_3, window_bounds = array<i64: 128, 64>}]} {
    %c0 = arith.constant 0 : index
    %c0_0 = arith.constant 0 : index
    %0 = vector.load %arg3[%c0, %c0_0] : memref<8x32xf32, #tpu.memory_space<vmem>>, vector<8x32xf32>
    %c0_1 = arith.constant 0 : index
    %c0_2 = arith.constant 0 : index
    %1 = vector.load %arg1[%c0_1, %c0_2] : memref<128x8xf32, #tpu.memory_space<vmem>>, vector<128x8xf32>
    %cst = arith.constant dense<0.000000e+00> : vector<128x32xf32>
    %2 = tpu.matmul %1, %0, %cst {dimension_numbers = #tpu.dot_dimension_numbers<[1], [0], [0], [1], [0, 0, 1, 1], [], []>} : vector<128x8xf32>, vector<8x32xf32>, vector<128x32xf32> -> vector<128x32xf32>
    %c0_3 = arith.constant 0 : index
    %c0_4 = arith.constant 0 : index
    %3 = vector.load %arg2[%c0_3, %c0_4] : memref<128x8xf32, #tpu.memory_space<vmem>>, vector<128x8xf32>
    %cst_5 = arith.constant dense<0.000000e+00> : vector<128x32xf32>
    %4 = tpu.matmul %3, %0, %cst_5 {dimension_numbers = #tpu.dot_dimension_numbers<[1], [0], [0], [1], [0, 0, 1, 1], [], []>} : vector<128x8xf32>, vector<8x32xf32>, vector<128x32xf32> -> vector<128x32xf32>
    %5 = tpu.concatenate %2, %4 in 1 : vector<128x32xf32>, vector<128x32xf32> -> vector<128x64xf32>
    %6 = arith.truncf %5 : vector<128x64xf32> to vector<128x64xbf16>
    %c0_6 = arith.constant 0 : index
    %c0_7 = arith.constant 0 : index
    %7 = vector.load %arg4[%c0_6, %c0_7] : memref<128x64xbf16, #tpu.memory_space<vmem>>, vector<128x64xbf16>
    tpu.vector_store %arg4[%c0_6, %c0_7], %6 {strides = array<i32>} : memref<128x64xbf16, #tpu.memory_space<vmem>>, vector<128x64xbf16>,
    return
  }
  func.func @transform_0(%arg0: i32) -> (i32, i32) {
    %c0_i32 = arith.constant 0 : i32
    %c0_i32_0 = arith.constant 0 : i32
    return %arg0, %c0_i32 : i32, i32
  }
  func.func @transform_1(%arg0: i32) -> (i32, i32) {
    %c0_i32 = arith.constant 0 : i32
    %c0_i32_0 = arith.constant 0 : i32
    return %arg0, %c0_i32 : i32, i32
  }
  func.func @transform_2(%arg0: i32) -> (i32, i32) {
    %c0_i32 = arith.constant 0 : i32
    %c0_i32_0 = arith.constant 0 : i32
    %c0_i32_1 = arith.constant 0 : i32
    return %c0_i32, %c0_i32_0 : i32, i32
  }
  func.func @transform_3(%arg0: i32) -> (i32, i32) {
    %c0_i32 = arith.constant 0 : i32
    %c0_i32_0 = arith.constant 0 : i32
    return %arg0, %c0_i32 : i32, i32
  }
}

</mosaic_0001>

<bundles_post_ra>
// kernel: tpu_custom_call.1
= control target key start
LH: loop header
LB: loop body
LE: loop exit
PB: predicated region body
PF: predicated region fallthrough
CT: control target
= control target key end

     0   :  { %s1087_s12 = smov 0   ;;  %s1258_s0 = inlined_call_operand.vmem [shape: f32[384,8], index: 0, kind: input, shape index: {}]   ;;  %s1259_s1 = inlined_call_operand.vmem [shape: f32[384,8], index: 1, kind: input, shape index: {}]   ;;  %s1260_s2 = inlined_call_operand.vmem [shape: f32[8,32], index: 2, kind: input, shape index: {}]   ;;  %s1261_s3 = inlined_call_operand.vmem [shape: bf16[384,64], index: 3, kind: output, shape index: {}]  }
   0x1 LB: > { %s846_s13 = sadd.s32 4294967295, %s1064_s12   ;;  %p850_p0 = scmp.ge.s32.totalorder %s1064_s12, 1  ;;  %s1064_s12 = sphi %s1087_s12, %s13_s12  }
   0x2   : > { %p149_p1 = scmp.lt.s32.totalorder %s1064_s12, 4 }
   0x4   : > { %p150_p2 = pnand %p850_p0, %p149_p1 }
   0x5   : > { %v196_v0 = vld [vmem:[%s1260_s2] sm:$0xff] (!%p150_p2)  ;;  %s851_s16 = sshll.u32 (!%p150_p2), %s846_s13, 4  ;;  %vm213_vm0 = vcmask (!%p150_p2), 64512   ;;  %s1066_s24 = smov (!%p150_p2), 32   ;;  %vm680_vm1 = vcmask (!%p150_p2), 261120   ;;  %vm761_vm2 = vcmask (!%p150_p2), 519168  }
   0x6   : > { %153 = sbr.rel (%p150_p2) target bundleno = 382 (0x17e), region = 32  ;;  %983 = vmatprep.subr.mxu1 (!%p150_p2), %v196_v0  ;;  %p179_p3 = scmp.lt.s32.totalorder (!%p150_p2), %s851_s16, 47  ;;  %957 = vmatprep.subr.mxu0 (!%p150_p2), %v196_v0 }
   0x7   : > { %984 = vmatpush3.msra.mxu1 (!%p150_p2), %v196_v0  ;;  %958 = vmatpush3.msra.mxu0 (!%p150_p2), %v196_v0 }
   0xd   : > { %s1263_s16 = smov (!%p179_p3, %s851_s16), 47 }
   0xe   : > { %s852_s17 = sshll.u32 %s1263_s16, 3  ;;  %s856_s25 = sshll.u32 %s1263_s16, 2 }
   0xf   : > { %s1104_s20 = scalar_lea.vmem %s1259_s1, %s852_s17  ;;  %s1114_s23 = scalar_lea.vmem %s1258_s0, %s852_s17 }
  0x10   : > { %v407_v1 = vld [vmem:[%s1104_s20] sm:$0xff]  ;;  %v408_v2 = vld [vmem:[%s1104_s20 + $0x8] sm:$0xff]  ;;  %v409_v3 = vld [vmem:[%s1104_s20 + $0x10] sm:$0xff]  ;;  %s1199_s28 = scalar_lea.vmem %s1261_s3, %s856_s25 }
  0x11   : > { %985 = vmatprep.mubr.msk.f32.mxu1 %vm213_vm0, %v407_v1  ;;  %v410_v4 = vld [vmem:[%s1104_s20 + $0x18] sm:$0xff]  ;;  %v411_v5 = vld [vmem:[%s1104_s20 + $0x20] sm:$0xff]  ;;  %v198_v7 = vld [vmem:[%s1114_s23 + $0x8] sm:$0xff] }
  0x12   : > { %986 = vmatmul.mubr.msk.f32.vlgmr.msra.gmra.mrb[0].mxu1 %vm213_vm0, %v408_v2  ;;  %v197_v6 = vld [vmem:[%s1114_s23] sm:$0xff]  ;;  %v199_v8 = vld [vmem:[%s1114_s23 + $0x10] sm:$0xff]  ;;  %v412_v9 = vld [vmem:[%s1104_s20 + $0x28] sm:$0xff] }
  0x13   : > { %988 = vmatprep.mubr.msk.f32.mxu1 %vm213_vm0, %v409_v3  ;;  %959 = vmatprep.mubr.msk.f32.mxu0 %vm213_vm0, %v197_v6  ;;  %v413_v10 = vld [vmem:[%s1104_s20 + $0x30] sm:$0xff]  ;;  %v200_v11 = vld [vmem:[%s1114_s23 + $0x18] sm:$0xff]  ;;  %v201_v12 = vld [vmem:[%s1114_s23 + $0x20] sm:$0xff] }
  0x14   : > { %960 = vmatmul.mubr.msk.f32.vlgmr.msra.gmra.mrb[0].mxu0 %vm213_vm0, %v198_v7  ;;  %v414_v13 = vld [vmem:[%s1104_s20 + $0x38] sm:$0xff]  ;;  %v415_v14 = vld [vmem:[%s1104_s20 + $0x40] sm:$0xff]  ;;  %v202_v15 = vld [vmem:[%s1114_s23 + $0x28] sm:$0xff] }
  0x15   : > { %962 = vmatprep.mubr.msk.f32.mxu0 %vm213_vm0, %v199_v8  ;;  %v203_v16 = vld [vmem:[%s1114_s23 + $0x30] sm:$0xff]  ;;  %v416_v17 = vld [vmem:[%s1104_s20 + $0x48] sm:$0xff]  ;;  %v204_v19 = vld [vmem:[%s1114_s23 + $0x38] sm:$0xff] }
  0x16   : > { %989 = vmatmul.mubr.msk.f32.gmra.mrb[2].mxu1 %vm213_vm0, %v410_v4  ;;  %v417_v18 = vld [vmem:[%s1104_s20 + $0x50] sm:$0xff]  ;;  %v205_v20 = vld [vmem:[%s1114_s23 + $0x40] sm:$0xff]  ;;  %v418_v21 = vld [vmem:[%s1104_s20 + $0x58] sm:$0xff] }
  0x17   : > { %991 = vmatprep.mubr.msk.f32.mxu1 %vm213_vm0, %v411_v5  ;;  %v419_v22 = vld [vmem:[%s1104_s20 + $0x60] sm:$0xff]  ;;  %v206_v23 = vld [vmem:[%s1114_s23 + $0x48] sm:$0xff]  ;;  %v207_v24 = vld [vmem:[%s1114_s23 + $0x50] sm:$0xff] }
  0x18   : > { %963 = vmatmul.mubr.msk.f32.gmra.mrb[2].mxu0 %vm213_vm0, %v200_v11  ;;  %v420_v25 = vld [vmem:[%s1104_s20 + $0x68] sm:$0xff]  ;;  %v421_v26 = vld [vmem:[%s1104_s20 + $0x70] sm:$0xff]  ;;  %v208_v27 = vld [vmem:[%s1114_s23 + $0x58] sm:$0xff] }
  0x19   : > { %965 = vmatprep.mubr.msk.f32.mxu0 %vm213_vm0, %v201_v12  ;;  %v209_v28 = vld [vmem:[%s1114_s23 + $0x60] sm:$0xff]  ;;  %v422_v29 = vld [vmem:[%s1104_s20 + $0x78] sm:$0xff]  ;;  %v210_v30 = vld [vmem:[%s1114_s23 + $0x68] sm:$0xff] }
  0x1a   : > { %992 = vmatmul.mubr.msk.f32.gmra.mrb[4].mxu1 %vm213_vm0, %v412_v9  ;;  %v211_v31 = vld [vmem:[%s1114_s23 + $0x70] sm:$0xff]  ;;  %v212_v32 = vld [vmem:[%s1114_s23 + $0x78] sm:$0xff] }
  0x1b   : > { %994 = vmatprep.mubr.msk.f32.mxu1 %vm213_vm0, %v413_v10 }
  0x1c   : > { %966 = vmatmul.mubr.msk.f32.gmra.mrb[4].mxu0 %vm213_vm0, %v202_v15 }
  0x1d   : > { %968 = vmatprep.mubr.msk.f32.mxu0 %vm213_vm0, %v203_v16 }
  0x1e   : > { %995 = vmatmul.mubr.msk.f32.gmra.mrb[6].mxu1 %vm213_vm0, %v414_v13 }
  0x1f   : > { %997 = vmatprep.mubr.msk.f32.mxu1 %vm213_vm0, %v415_v14 }
  0x20   : > { %969 = vmatmul.mubr.msk.f32.gmra.mrb[6].mxu0 %vm213_vm0, %v204_v19 }
  0x21   : > { %971 = vmatprep.mubr.msk.f32.mxu0 %vm213_vm0, %v205_v20 }
  0x22   : > { %998 = vmatmul.mubr.msk.f32.gmra.mrb[8].mxu1 %vm213_vm0, %v416_v17 }
  0x23   : > { %1000 = vmatprep.mubr.msk.f32.mxu1 %vm213_vm0, %v417_v18 }
  0x24   : > { %972 = vmatmul.mubr.msk.f32.gmra.mrb[8].mxu0 %vm213_vm0, %v206_v23 }
  0x25   : > { %974 = vmatprep.mubr.msk.f32.mxu0 %vm213_vm0, %v207_v24 }
  0x26   : > { %1001 = vmatmul.mubr.msk.f32.gmra.mrb[10].mxu1 %vm213_vm0, %v418_v21 }
  0x27   : > { %1003 = vmatprep.mubr.msk.f32.mxu1 %vm213_vm0, %v419_v22 }
  0x28   : > { %975 = vmatmul.mubr.msk.f32.gmra.mrb[10].mxu0 %vm213_vm0, %v208_v27 }
  0x29   : > { %977 = vmatprep.mubr.msk.f32.mxu0 %vm213_vm0, %v209_v28 }
  0x2a   : > { %1004 = vmatmul.mubr.msk.f32.gmra.mrb[12].mxu1 %vm213_vm0, %v420_v25 }
  0x2b   : > { %1006 = vmatprep.mubr.msk.f32.mxu1 %vm213_vm0, %v421_v26 }
  0x2c   : > { %978 = vmatmul.mubr.msk.f32.gmra.mrb[12].mxu0 %vm213_vm0, %v210_v30 }
  0x2d   : > { %980 = vmatprep.mubr.msk.f32.mxu0 %vm213_vm0, %v211_v31 }
  0x2e   : > { %1007 = vmatmul.mubr.msk.f32.gmra.mrb[14].mxu1 %vm213_vm0, %v422_v29 }
  0x30   : > { %981 = vmatmul.mubr.msk.f32.gmra.mrb[14].mxu0 %vm213_vm0, %v212_v32 }
  0xe5   : > { %v987_v33 = vpop.f32.mrb[0].mxu1 }
  0xe6   : > { %v537_v34 = vpop.f32.mrb[1].mxu1 }
  0xe7   : > { %v1018_v35 = vpack.i.bf16 %v987_v33, %v537_v34  ;;  %v961_v38 = vpop.f32.mrb[0].mxu0 }
  0xe8   : > { %v328_v40 = vpop.f32.mrb[1].mxu0 }
  0xe9   : > { %1019 = vrot.lane.b32.xlu0 %v1018_v35, %s1066_s24  ;;  %v990_v36 = vpop.f32.mrb[2].mxu1 }
  0xea   : > { %v547_v37 = vpop.f32.mrb[3].mxu1 }
  0xeb   : > { %v1023_v39 = vpack.i.bf16 %v990_v36, %v547_v37  ;;  %v964_v43 = vpop.f32.mrb[2].mxu0 }
  0xec   : > { %v338_v45 = vpop.f32.mrb[3].mxu0 }
  0xed   : > { %1024 = vrot.lane.b32.xlu0 %v1023_v39, %s1066_s24  ;;  %v993_v41 = vpop.f32.mrb[4].mxu1 }
  0xee   : > { %v557_v42 = vpop.f32.mrb[5].mxu1 }
  0xef   : > { %v1028_v44 = vpack.i.bf16 %v993_v41, %v557_v42  ;;  %v967_v48 = vpop.f32.mrb[4].mxu0 }
  0xf0   : > { %v348_v50 = vpop.f32.mrb[5].mxu0 }
  0xf1   : > { %1029 = vrot.lane.b32.xlu1 %v1028_v44, %s1066_s24  ;;  %v996_v46 = vpop.f32.mrb[6].mxu1 }
  0xf2   : > { %v567_v47 = vpop.f32.mrb[7].mxu1 }
  0xf3   : > { %v1033_v49 = vpack.i.bf16 %v996_v46, %v567_v47  ;;  %v970_v53 = vpop.f32.mrb[6].mxu0 }
  0xf4   : > { %v358_v55 = vpop.f32.mrb[7].mxu0 }
  0xf5   : > { %1034 = vrot.lane.b32.xlu1 %v1033_v49, %s1066_s24  ;;  %v999_v51 = vpop.f32.mrb[8].mxu1 }
  0xf6   : > { %v577_v52 = vpop.f32.mrb[9].mxu1 }
  0xf7   : > { %v1038_v54 = vpack.i.bf16 %v999_v51, %v577_v52  ;;  %v973_v58 = vpop.f32.mrb[8].mxu0 }
  0xf8   : > { %v368_v60 = vpop.f32.mrb[9].mxu0 }
  0xf9   : > { %1039 = vrot.lane.b32.xlu0 %v1038_v54, %s1066_s24  ;;  %v1002_v56 = vpop.f32.mrb[10].mxu1 }
  0xfa   : > { %v587_v57 = vpop.f32.mrb[11].mxu1 }
  0xfb   : > { %v1043_v59 = vpack.i.bf16 %v1002_v56, %v587_v57  ;;  %v1181_v63 = vpop.f32.mrb[10].mxu0 }
  0xfc   : > { %v1183_v1 = vpop.f32.mrb[11].mxu0 }
  0xfd   : > { %1044 = vrot.lane.b32.xlu1 %v1043_v59, %s1066_s24  ;;  %v1005_v61 = vpop.f32.mrb[12].mxu1 }
  0xfe   : > { %v597_v62 = vpop.f32.mrb[13].mxu1 }
  0xff   : > { %v1048_v0 = vpack.i.bf16 %v1005_v61, %v597_v62  ;;  %v1186_v4 = vpop.f32.mrb[12].mxu0 }
 0x100   : > { %v1188_v6 = vpop.f32.mrb[13].mxu0 }
 0x101   : > { %1049 = vrot.lane.b32.xlu0 %v1048_v0, %s1066_s24  ;;  %v1008_v2 = vpop.f32.mrb[14].mxu1 }
 0x102   : > { %v607_v3 = vpop.f32.mrb[15].mxu1 }
 0x103   : > { %v1053_v5 = vpack.i.bf16 %v1008_v2, %v607_v3  ;;  %v1191_v7 = vpop.f32.mrb[14].mxu0 }
 0x104   : > { %v1193_v8 = vpop.f32.mrb[15].mxu0 }
 0x105   : > { %1054 = vrot.lane.b32.xlu1 %v1053_v5, %s1066_s24 }
 0x15b   : > { %v1020_v9 = vpop.permute.xlu0 %1019 }
 0x15c   : > { %v1022_v10 = vunpack.i.h.bf16 %v1020_v9  ;;  %v1021_v11 = vunpack.i.l.bf16 %v1020_v9 }
 0x15e   : > { %v682_v12 = vsel %vm680_vm1, %v961_v38, %v1022_v10  ;;  %v681_v13 = vsel %vm680_vm1, %v328_v40, %v1021_v11 }
 0x15f   : > { %v908_v14 = vpack.c.bf16 %v682_v12, %v682_v12  ;;  %v907_v15 = vpack.c.bf16 %v681_v13, %v681_v13  ;;  %v1025_v16 = vpop.permute.xlu0 %1024 }
 0x160   : > { %v1027_v17 = vunpack.i.h.bf16 %v1025_v16  ;;  %v1026_v18 = vunpack.i.l.bf16 %v1025_v16 }
 0x161   : > { %763 = vst.msk [vmem:[%s1199_s28 + $0x4] sm:$0xf] %vm761_vm2, %v908_v14  ;;  %762 = vst.msk [vmem:[%s1199_s28] sm:$0xf] %vm761_vm2, %v907_v15 }
 0x162   : > { %v684_v19 = vsel %vm680_vm1, %v964_v43, %v1027_v17  ;;  %v683_v20 = vsel %vm680_vm1, %v338_v45, %v1026_v18 }
 0x163   : > { %v910_v21 = vpack.c.bf16 %v684_v19, %v684_v19  ;;  %v909_v22 = vpack.c.bf16 %v683_v20, %v683_v20  ;;  %v1030_v23 = vpop.permute.xlu1 %1029 }
 0x164   : > { %v1032_v24 = vunpack.i.h.bf16 %v1030_v23  ;;  %v1031_v25 = vunpack.i.l.bf16 %v1030_v23 }
 0x165   : > { %765 = vst.msk [vmem:[%s1199_s28 + $0xc] sm:$0xf] %vm761_vm2, %v910_v21  ;;  %764 = vst.msk [vmem:[%s1199_s28 + $0x8] sm:$0xf] %vm761_vm2, %v909_v22 }
 0x166   : > { %v686_v26 = vsel %vm680_vm1, %v967_v48, %v1032_v24  ;;  %v685_v27 = vsel %vm680_vm1, %v348_v50, %v1031_v25 }
 0x167   : > { %v912_v28 = vpack.c.bf16 %v686_v26, %v686_v26  ;;  %v911_v29 = vpack.c.bf16 %v685_v27, %v685_v27  ;;  %v1035_v30 = vpop.permute.xlu1 %1034 }
 0x168   : > { %v1037_v31 = vunpack.i.h.bf16 %v1035_v30  ;;  %v1036_v32 = vunpack.i.l.bf16 %v1035_v30 }
 0x169   : > { %767 = vst.msk [vmem:[%s1199_s28 + $0x14] sm:$0xf] %vm761_vm2, %v912_v28  ;;  %766 = vst.msk [vmem:[%s1199_s28 + $0x10] sm:$0xf] %vm761_vm2, %v911_v29 }
 0x16a   : > { %v688_v33 = vsel %vm680_vm1, %v970_v53, %v1037_v31  ;;  %v687_v34 = vsel %vm680_vm1, %v358_v55, %v1036_v32 }
 0x16b   : > { %v914_v35 = vpack.c.bf16 %v688_v33, %v688_v33  ;;  %v913_v36 = vpack.c.bf16 %v687_v34, %v687_v34  ;;  %v1040_v37 = vpop.permute.xlu0 %1039 }
 0x16c   : > { %v1042_v38 = vunpack.i.h.bf16 %v1040_v37  ;;  %v1041_v39 = vunpack.i.l.bf16 %v1040_v37 }
 0x16d   : > { %769 = vst.msk [vmem:[%s1199_s28 + $0x1c] sm:$0xf] %vm761_vm2, %v914_v35  ;;  %768 = vst.msk [vmem:[%s1199_s28 + $0x18] sm:$0xf] %vm761_vm2, %v913_v36 }
 0x16e   : > { %v690_v40 = vsel %vm680_vm1, %v973_v58, %v1042_v38  ;;  %v689_v41 = vsel %vm680_vm1, %v368_v60, %v1041_v39 }
 0x16f   : > { %v916_v42 = vpack.c.bf16 %v690_v40, %v690_v40  ;;  %v915_v43 = vpack.c.bf16 %v689_v41, %v689_v41  ;;  %v1045_v44 = vpop.permute.xlu1 %1044 }
 0x170   : > { %v1047_v45 = vunpack.i.h.bf16 %v1045_v44  ;;  %v1046_v46 = vunpack.i.l.bf16 %v1045_v44 }
 0x171   : > { %771 = vst.msk [vmem:[%s1199_s28 + $0x24] sm:$0xf] %vm761_vm2, %v916_v42  ;;  %770 = vst.msk [vmem:[%s1199_s28 + $0x20] sm:$0xf] %vm761_vm2, %v915_v43 }
 0x172   : > { %v692_v47 = vsel %vm680_vm1, %v1181_v63, %v1047_v45  ;;  %v691_v48 = vsel %vm680_vm1, %v1183_v1, %v1046_v46 }
 0x173   : > { %v918_v49 = vpack.c.bf16 %v692_v47, %v692_v47  ;;  %v917_v50 = vpack.c.bf16 %v691_v48, %v691_v48  ;;  %v1050_v51 = vpop.permute.xlu0 %1049 }
 0x174   : > { %v1052_v52 = vunpack.i.h.bf16 %v1050_v51  ;;  %v1051_v53 = vunpack.i.l.bf16 %v1050_v51 }
 0x175   : > { %773 = vst.msk [vmem:[%s1199_s28 + $0x2c] sm:$0xf] %vm761_vm2, %v918_v49  ;;  %772 = vst.msk [vmem:[%s1199_s28 + $0x28] sm:$0xf] %vm761_vm2, %v917_v50 }
 0x176   : > { %v694_v54 = vsel %vm680_vm1, %v1186_v4, %v1052_v52  ;;  %v693_v55 = vsel %vm680_vm1, %v1188_v6, %v1051_v53 }
 0x177   : > { %v920_v56 = vpack.c.bf16 %v694_v54, %v694_v54  ;;  %v919_v57 = vpack.c.bf16 %v693_v55, %v693_v55  ;;  %v1055_v58 = vpop.permute.xlu1 %1054 }
 0x178   : > { %v1057_v59 = vunpack.i.h.bf16 %v1055_v58  ;;  %v1056_v60 = vunpack.i.l.bf16 %v1055_v58 }
 0x179   : > { %775 = vst.msk [vmem:[%s1199_s28 + $0x34] sm:$0xf] %vm761_vm2, %v920_v56  ;;  %774 = vst.msk [vmem:[%s1199_s28 + $0x30] sm:$0xf] %vm761_vm2, %v919_v57 }
 0x17a   : > { %v696_v61 = vsel %vm680_vm1, %v1191_v7, %v1057_v59  ;;  %v695_v62 = vsel %vm680_vm1, %v1193_v8, %v1056_v60 }
 0x17b   : > { %v922_v63 = vpack.c.bf16 %v696_v61, %v696_v61  ;;  %v921_v0 = vpack.c.bf16 %v695_v62, %v695_v62 }
 0x17d   : > { %777 = vst.msk [vmem:[%s1199_s28 + $0x3c] sm:$0xf] %vm761_vm2, %v922_v63  ;;  %776 = vst.msk [vmem:[%s1199_s28 + $0x38] sm:$0xf] %vm761_vm2, %v921_v0 }
 0x17e PF: > { %s13_s12 = sadd.s32 1, %s1064_s12  }
 0x17f   : > { %p10_p4 = scmp.ge.s32.totalorder %s13_s12, 5  }
 0x181   :  { %12 = sbr.rel (!%p10_p4) target bundleno = 1 (0x1), region = 65 }

</bundles_post_ra>
